<compile_context>
chip_gen: v6e
topology: v6e:2x2x1
jax: 0.10.0
libtpu: 0.0.40
codegen_flags: <defaults>
</compile_context>

<pallas_src>
import functools

import jax
import jax.numpy as jnp
from jax.experimental import pallas as pl
from jax.experimental.pallas import tpu as pltpu


# ---------------------------------------------------------------------------
# helpers
# ---------------------------------------------------------------------------
def _cdiv(a, b):
    return (a + b - 1) // b


def _round_up(x, m):
    return _cdiv(x, m) * m


def _device_kind():
    try:
        return jax.devices()[0].device_kind.lower()
    except Exception:
        return ""


def _vmem_limit_bytes():
    """Scoped-VMEM limit ~= 0.75 x physical (96 MiB v5e/v6e, 48 MiB v7x)."""
    cap = None
    try:
        cap = int(pltpu.get_tpu_info().vmem_capacity_bytes)
    except Exception:
        cap = None
    if not cap:
        cap = 64 * 1024 * 1024 if "v7" in _device_kind() else 128 * 1024 * 1024
    return cap * 3 // 4


_INT8_MXU = None


def _use_int8_mxu():
    """True when Pallas can lower a native int8 MXU matmul (v5e/v6e).

    v7x's MXU has no integer path, so it keeps the bf16 route. A tiny one-time
    probe protects against any lowering gap on unknown parts."""
    global _INT8_MXU
    if _INT8_MXU is not None:
        return _INT8_MXU
    if "v7" in _device_kind():
        _INT8_MXU = False
        return _INT8_MXU

    def probe_kernel(a_ref, b_ref, o_ref):
        o_ref[...] = jnp.dot(a_ref[...], b_ref[...],
                             preferred_element_type=jnp.int32)

    try:
        a = jnp.full((128, 128), 3, jnp.int8)
        b = jnp.full((128, 128), 2, jnp.int8)
        out = pl.pallas_call(
            probe_kernel,
            out_shape=jax.ShapeDtypeStruct((128, 128), jnp.int32),
        )(a, b)
        jax.block_until_ready(out)
        _INT8_MXU = bool(jnp.all(out == 6 * 128))
    except Exception:
        _INT8_MXU = False
    return _INT8_MXU


# ---------------------------------------------------------------------------
# Kernel 1: dynamic per-token int8 quantization
# ---------------------------------------------------------------------------
def _quant_kernel(x_ref, q_ref, s_ref, *, eps):
    # x_ref: (TM, K) narrow dtype, q_ref: (TM, K) int8, s_ref: (TM, 1) f32
    x = x_ref[...]
    # abs / max reduce in the input dtype (exact: inputs already live in it),
    # only the per-row scale and the scaled values are formed in f32.
    absmax = jnp.max(jnp.abs(x), axis=-1, keepdims=True).astype(jnp.float32)
    absmax = jnp.maximum(absmax, eps)
    scale = absmax / 127.0
    # Exact divide (quant pass is HBM-bound): bit-parity with round(x / scale).
    q = jnp.round(x.astype(jnp.float32) / scale)
    q = jnp.clip(q, -128.0, 127.0)
    q_ref[...] = q.astype(jnp.int8)
    s_ref[...] = scale
    # TODO(synk): emit the scale lane-dense as (1, tm) to avoid masked column
    # stores; skipped (negligible byte fraction, consumed as a column anyway).


def _choose_row_tile(m, k, in_itemsize, vmem_limit, cap=1024):
    """Row tile: multiple of 32 (int8 sublane packing), VMEM-aware, and >= 2
    grid steps when there is enough work (dual-TensorCore parts)."""
    bytes_per_row = k * (2 * in_itemsize + 2) + 16   # double-buffered in + out
    budget = vmem_limit * 3 // 4
    tm = max(32, (budget // max(bytes_per_row, 1)) // 32 * 32)
    tm = min(tm, cap)
    if m >= 64:
        tm = min(tm, _round_up(_cdiv(m, 2), 32))
    return min(tm, m)                                 # tm == m -> full-dim block


def per_token_quant_int8(x, eps=1e-7, *, row_tile_cap=1024, vmem_limit=None):
    """x: (..., K) float -> (q int8 same shape, scale f32 (..., 1))."""
    orig_shape = x.shape
    K = orig_shape[-1]
    x2d = x.reshape(-1, K)
    M = x2d.shape[0]
    if vmem_limit is None:
        vmem_limit = _vmem_limit_bytes()

    tm = _choose_row_tile(M, K, x2d.dtype.itemsize, vmem_limit, cap=row_tile_cap)
    grid = (_cdiv(M, tm),)   # partial last block handled by Pallas (no host pad)

    q, scale = pl.pallas_call(
        functools.partial(_quant_kernel, eps=eps),
        out_shape=(
            jax.ShapeDtypeStruct((M, K), jnp.int8),
            jax.ShapeDtypeStruct((M, 1), jnp.float32),
        ),
        grid_spec=pltpu.PrefetchScalarGridSpec(
            num_scalar_prefetch=0,
            grid=grid,
            in_specs=[pl.BlockSpec((tm, K), lambda i: (i, 0))],
            out_specs=[
                pl.BlockSpec((tm, K), lambda i: (i, 0)),
                pl.BlockSpec((tm, 1), lambda i: (i, 0)),
            ],
        ),
        compiler_params=pltpu.CompilerParams(
            dimension_semantics=("parallel",),
            vmem_limit_bytes=vmem_limit),
    )(x2d)

    return q.reshape(orig_shape), scale.reshape(orig_shape[:-1] + (1,))


# ---------------------------------------------------------------------------
# Kernel 2: int8 matmul + fused dequant (per-token x per-channel) + bias
# ---------------------------------------------------------------------------
def _qmm_kernel(*refs, use_int8, has_bias):
    if has_bias:
        a_ref, w_ref, asc_ref, wsc_ref, b_ref, o_ref, acc_ref = refs
    else:
        a_ref, w_ref, asc_ref, wsc_ref, o_ref, acc_ref = refs
        b_ref = None
    k = pl.program_id(2)

    @pl.when(k == 0)
    def _():
        acc_ref[...] = jnp.zeros_like(acc_ref)

    if use_int8:
        # Native int8 MXU path (v5e/v6e): exact int32 accumulation, no VPU casts.
        acc_ref[...] += jnp.dot(a_ref[...], w_ref[...],
                                preferred_element_type=jnp.int32)
    else:
        # v7x MXU has no integer path: int8 values are exact in bf16 per
        # product; f32 accumulation only loses integer exactness once partial
        # sums exceed 2^24 (~1e-7 relative error, fine for fp16 output).
        a = a_ref[...].astype(jnp.bfloat16)          # (tm, tk)
        w = w_ref[...].astype(jnp.bfloat16)          # (tk, tn)
        acc_ref[...] += jnp.dot(a, w, preferred_element_type=jnp.float32)

    @pl.when(k == pl.num_programs(2) - 1)
    def _():
        deq = acc_ref[...].astype(jnp.float32) * asc_ref[...]   # (tm,tn)*(tm,1)
        deq = deq * wsc_ref[...]                                 # * (1,tn)
        if has_bias:
            deq = deq + b_ref[...]                               # + (1,tn)
        o_ref[...] = deq.astype(o_ref.dtype)


def _choose_k_tile(k, cap):
    """K tile must divide K exactly (padded garbage would corrupt accumulation)."""
    for cand in (4096, 2048, 1024, 512, 256, 128):
        if cand <= cap and k % cand == 0:
            return cand
    # K not a multiple of 128: single full-K slab; footprint check below
    # shrinks tm/tn if that slab is large.
    return k


def _matmul_footprint(tm, tn, tk, w_bufs):
    a_bytes = 2 * tm * tk               # int8 activations, double-buffered
    w_bytes = w_bufs * tk * tn          # int8 weights
    out_bytes = 2 * tm * tn * 2         # f16 output, double-buffered
    acc_bytes = tm * tn * 4             # accumulator scratch
    scale_bytes = 2 * (tm + 2 * tn) * 4
    return a_bytes + w_bytes + out_bytes + acc_bytes + scale_bytes


def _choose_matmul_tiles(M, N, K, vmem_limit, tm_cap, tn_cap, tk_cap):
    if M <= 128:
        tn_cap = max(tn_cap, 1024)      # decode: wider, lane-dense output tiles
    tm = M if M <= tm_cap else tm_cap   # caps are multiples of 128
    tn = N if N <= tn_cap else tn_cap
    tk = _choose_k_tile(K, tk_cap)

    # Keep >= 2 (i, j) blocks when possible so both of v7x's TensorCores get
    # work under the "parallel" grid axes.
    if _cdiv(M, tm) * _cdiv(N, tn) < 2 and N >= 256:
        tn = _round_up(_cdiv(N, 2), 128)

    w_bufs = 3 if _cdiv(K, tk) >= 3 else 2
    budget = vmem_limit * 3 // 4        # headroom for compiler scratch
    while _matmul_footprint(tm, tn, tk, w_bufs) > budget:
        if tk >= 256 and K % (tk // 2) == 0:
            tk //= 2
        elif tn > 128:
            tn = max(128, (tn // 2) // 128 * 128)
        elif tm > 32:
            tm = max(32, (tm // 2) // 32 * 32)
        else:
            break
    return tm, tn, tk, w_bufs


def quant_matmul_dynamic_dequant(a_q, w_t, a_scale, w_scale_row, bias_row=None,
                                 out_dtype=jnp.float16, *,
                                 tm_cap=512, tn_cap=512, tk_cap=2048,
                                 vmem_limit=None):
    """a_q: (M, K) int8, w_t: (K, N) int8 (pre-transposed at init),
    a_scale: (M, 1) f32, w_scale_row: (1, N) f32, bias_row: (1, N) f32 or None
    -> (M, N) out_dtype."""
    M, K = a_q.shape
    Kw, N = w_t.shape
    assert K == Kw, "in_features mismatch"
    if vmem_limit is None:
        vmem_limit = _vmem_limit_bytes()

    tm, tn, tk, w_bufs = _choose_matmul_tiles(M, N, K, vmem_limit,
                                              tm_cap, tn_cap, tk_cap)
    use_int8 = _use_int8_mxu()
    has_bias = bias_row is not None

    a_scale = a_scale.reshape(M, 1).astype(jnp.float32)
    w_scale_row = w_scale_row.reshape(1, N).astype(jnp.float32)

    # Deeper buffering on the weight stream (decode is weight-DMA bound); only
    # engaged when the K grid actually has >= 3 steps.
    w_index_map = lambda i, j, k: (k, j)
    if w_bufs >= 3:
        try:
            w_spec = pl.BlockSpec((tk, tn), w_index_map,
                                  pipeline_mode=pl.Buffered(w_bufs))
        except TypeError:
            w_spec = pl.BlockSpec((tk, tn), w_index_map)
    else:
        w_spec = pl.BlockSpec((tk, tn), w_index_map)

    in_specs = [
        pl.BlockSpec((tm, tk), lambda i, j, k: (i, k)),
        w_spec,
        pl.BlockSpec((tm, 1), lambda i, j, k: (i, 0)),
        pl.BlockSpec((1, tn), lambda i, j, k: (0, j)),
    ]
    args = [a_q, w_t, a_scale, w_scale_row]
    if has_bias:
        in_specs.append(pl.BlockSpec((1, tn), lambda i, j, k: (0, j)))
        args.append(bias_row.reshape(1, N).astype(jnp.float32))

    acc_dtype = jnp.int32 if use_int8 else jnp.float32
    grid = (_cdiv(M, tm), _cdiv(N, tn), _cdiv(K, tk))   # K % tk == 0 guaranteed

    out = pl.pallas_call(
        functools.partial(_qmm_kernel, use_int8=use_int8, has_bias=has_bias),
        out_shape=jax.ShapeDtypeStruct((M, N), out_dtype),
        grid_spec=pltpu.PrefetchScalarGridSpec(
            num_scalar_prefetch=0,
            grid=grid,
            in_specs=in_specs,
            out_specs=pl.BlockSpec((tm, tn), lambda i, j, k: (i, j)),
            scratch_shapes=[pltpu.VMEM((tm, tn), acc_dtype)],
        ),
        compiler_params=pltpu.CompilerParams(
            dimension_semantics=("parallel", "parallel", "arbitrary"),
            vmem_limit_bytes=vmem_limit),
    )(*args)
    return out


# ---------------------------------------------------------------------------
# QLinear.forward equivalent + init-time weight prep
# ---------------------------------------------------------------------------
def per_channel_quant(w, nbits=8):
    """Host-side QLinear.from_float / per_channel_quant (module init)."""
    qmax = 2 ** (nbits - 1) - 1
    absmax = jnp.max(jnp.abs(w.astype(jnp.float32)), axis=1, keepdims=True)
    scale = absmax / qmax
    q = jnp.clip(jnp.round(w.astype(jnp.float32) / scale),
                 -(2 ** (nbits - 1)), qmax).astype(jnp.int8)
    return q, scale.astype(jnp.float32)


def prepare_qlinear_weights(w_q, w_scale, bias=None):
    """One-time (module init) packing: transpose the (N, K) int8 weight to the
    MXU-friendly (K, N) layout so the forward never pays a per-call HBM
    transpose, and pre-shape scale / bias as (1, N) row vectors."""
    N, K = w_q.shape
    w_t = jnp.asarray(w_q.T)                                   # (K, N) int8
    w_scale_row = jnp.asarray(w_scale).reshape(1, N).astype(jnp.float32)
    bias_row = None
    if bias is not None:
        bias_row = jnp.asarray(bias).reshape(1, N).astype(jnp.float32)
    return w_t, w_scale_row, bias_row


def qlinear_forward(x, prepared_weights, eps=1e-7, out_dtype=jnp.float16):
    """x: (..., in_features) float; prepared_weights from prepare_qlinear_weights."""
    w_t, w_scale_row, bias_row = prepared_weights
    K, N = w_t.shape
    orig_shape = x.shape
    x2d = x.reshape(-1, K)
    # TODO(synk): for small-M decode, fuse the per-token quant into the matmul
    # kernel (quantize the row block into persistent VMEM scratch at j==0,k==0)
    # to skip the int8 HBM round trip and one kernel launch.
    q, a_scale = per_token_quant_int8(x2d, eps)
    out2d = quant_matmul_dynamic_dequant(q, w_t, a_scale, w_scale_row,
                                         bias_row, out_dtype)
    return out2d.reshape(orig_shape[:-1] + (N,))


# ---------------------------------------------------------------------------
# Demo / correctness check
# ---------------------------------------------------------------------------
if __name__ == "__main__":
    key = jax.random.PRNGKey(0)
    batch, seq, in_features, out_features = 2, 8, 32, 64
    eps = 1e-7

    kx, kw, kb = jax.random.split(key, 3)
    # Keep activations 16-bit on the HBM side; upcast happens inside the kernel.
    x = jax.random.normal(kx, (batch, seq, in_features),
                          dtype=jnp.float32).astype(jnp.bfloat16)
    w = jax.random.normal(kw, (out_features, in_features), dtype=jnp.float32)
    bias = jax.random.normal(kb, (out_features,), dtype=jnp.float32)

    w_q, w_scale = per_channel_quant(w)
    prepared = prepare_qlinear_weights(w_q, w_scale, bias)   # one-time init

    out = qlinear_forward(x, prepared, eps)
    jax.block_until_ready(out)
    assert out.shape == (batch, seq, out_features)
    assert out.dtype == jnp.float16

    # --- stage 1 reference: per-token int8 quantization --------------------
    x2d = x.reshape(-1, in_features)
    q, a_scale = per_token_quant_int8(x2d, eps)
    jax.block_until_ready(q)

    xf = x2d.astype(jnp.float32)
    absmax_ref = jnp.maximum(jnp.max(jnp.abs(xf), axis=-1, keepdims=True), eps)
    scale_ref = absmax_ref / 127.0
    q_ref = jnp.clip(jnp.round(xf / scale_ref), -128, 127).astype(jnp.int8)
    assert jnp.allclose(a_scale, scale_ref, rtol=1e-6, atol=1e-9)
    # Exact divide in-kernel: codes should match (<=1 LSB kept as safety margin
    # against divide/round corner-case ULP differences between code paths).
    assert jnp.max(jnp.abs(q.astype(jnp.int32) - q_ref.astype(jnp.int32))) <= 1

    # --- stage 2 reference: matmul + dequant + bias, built from the kernel's
    # own q / a_scale so stage-1 tolerance does not leak in --------------------
    acc = jnp.dot(q.astype(jnp.int32), w_q.astype(jnp.int32).T)
    ref = (acc.astype(jnp.float32) * a_scale * w_scale.reshape(1, -1)
           + bias.astype(jnp.float32)).astype(jnp.float16)
    out2d = out.reshape(-1, out_features)
    assert jnp.allclose(out2d.astype(jnp.float32), ref.astype(jnp.float32),
                        rtol=1e-2, atol=1e-2)

    # Bias-less path (separate kernel variant, no dummy zero bias).
    prepared_nb = prepare_qlinear_weights(w_q, w_scale, None)
    out_nb = qlinear_forward(x, prepared_nb, eps)
    jax.block_until_ready(out_nb)
    ref_nb = (acc.astype(jnp.float32) * a_scale
              * w_scale.reshape(1, -1)).astype(jnp.float16)
    assert jnp.allclose(out_nb.reshape(-1, out_features).astype(jnp.float32),
                        ref_nb.astype(jnp.float32), rtol=1e-2, atol=1e-2)

    print("KERNEL_OK")
</pallas_src>

<mosaic_0001>
module attributes {stable_mosaic.version = 11 : i64} {
  func.func @_quant_kernel(%arg0: i32, %arg1: memref<16x32xbf16, #tpu.memory_space<vmem>>, %arg2: memref<16x32xi8, #tpu.memory_space<vmem>>, %arg3: memref<16x1xf32, #tpu.memory_space<vmem>>) attributes {dimension_semantics = [#tpu.dimension_semantics<parallel>], iteration_bounds = array<i64: 1>, scalar_prefetch = 0 : i64, scratch_operands = 0 : i64, tpu.core_type = #tpu.core_type<tc>, window_params = [{transform_indices = @transform_0, window_bounds = array<i64: 16, 32>}, {transform_indices = @transform_1, window_bounds = array<i64: 16, 32>}, {transform_indices = @transform_2, window_bounds = array<i64: 16, 1>}]} {
    %c0 = arith.constant 0 : index
    %c0_0 = arith.constant 0 : index
    %0 = vector.load %arg1[%c0, %c0_0] : memref<16x32xbf16, #tpu.memory_space<vmem>>, vector<16x32xbf16>
    %1 = math.absf %0 : vector<16x32xbf16>
    %cst = arith.constant dense<0xFF80> : vector<16xbf16>
    %2 = vector.multi_reduction <maximumf>, %1, %cst [1] : vector<16x32xbf16> to vector<16xbf16>
    %3 = vector.shape_cast %2 : vector<16xbf16> to vector<16x1xbf16>
    %4 = arith.extf %3 : vector<16x1xbf16> to vector<16x1xf32>
    %cst_1 = arith.constant 1.000000e-07 : f32
    %5 = vector.broadcast %cst_1 : f32 to vector<16x1xf32>
    %6 = arith.maximumf %4, %5 : vector<16x1xf32>
    %cst_2 = arith.constant 1.270000e+02 : f32
    %7 = vector.broadcast %cst_2 : f32 to vector<16x1xf32>
    %8 = arith.divf %6, %7 : vector<16x1xf32>
    %9 = arith.extf %0 : vector<16x32xbf16> to vector<16x32xf32>
    %10 = vector.broadcast %8 : vector<16x1xf32> to vector<16x32xf32>
    %11 = arith.divf %9, %10 : vector<16x32xf32>
    %12 = math.roundeven %11 : vector<16x32xf32>
    %cst_3 = arith.constant -1.280000e+02 : f32
    %cst_4 = arith.constant 1.270000e+02 : f32
    %13 = vector.broadcast %cst_3 : f32 to vector<16x32xf32>
    %14 = arith.maximumf %13, %12 : vector<16x32xf32>
    %15 = vector.broadcast %cst_4 : f32 to vector<16x32xf32>
    %16 = arith.minimumf %15, %14 : vector<16x32xf32>
    %17 = arith.fptosi %16 : vector<16x32xf32> to vector<16x32xi8>
    %c0_5 = arith.constant 0 : index
    %c0_6 = arith.constant 0 : index
    %18 = vector.load %arg2[%c0_5, %c0_6] : memref<16x32xi8, #tpu.memory_space<vmem>>, vector<16x32xi8>
    tpu.vector_store %arg2[%c0_5, %c0_6], %17 {strides = array<i32>} : memref<16x32xi8, #tpu.memory_space<vmem>>, vector<16x32xi8>,
    %c0_7 = arith.constant 0 : index
    %c0_8 = arith.constant 0 : index
    %19 = vector.load %arg3[%c0_7, %c0_8] : memref<16x1xf32, #tpu.memory_space<vmem>>, vector<16x1xf32>
    tpu.vector_store %arg3[%c0_7, %c0_8], %8 {strides = array<i32>} : memref<16x1xf32, #tpu.memory_space<vmem>>, vector<16x1xf32>,
    return
  }
  func.func @transform_0(%arg0: i32) -> (i32, i32) {
    %c0_i32 = arith.constant 0 : i32
    %c0_i32_0 = arith.constant 0 : i32
    return %arg0, %c0_i32 : i32, i32
  }
  func.func @transform_1(%arg0: i32) -> (i32, i32) {
    %c0_i32 = arith.constant 0 : i32
    %c0_i32_0 = arith.constant 0 : i32
    return %arg0, %c0_i32 : i32, i32
  }
  func.func @transform_2(%arg0: i32) -> (i32, i32) {
    %c0_i32 = arith.constant 0 : i32
    %c0_i32_0 = arith.constant 0 : i32
    return %arg0, %c0_i32 : i32, i32
  }
}

</mosaic_0001>

<bundles_post_ra>
// kernel: tpu_custom_call.1
= control target key start
LH: loop header
LB: loop body
LE: loop exit
PB: predicated region body
PF: predicated region fallthrough
CT: control target
= control target key end

     0   :  { %8 = vsyncpa [#allocation3], 0  ;;  %s198_s0 = inlined_call_operand.hbm [shape: bf16[16,32], index: 0, kind: input, shape index: {}]   ;;  %s199_s1 = inlined_call_operand.hbm [shape: s8[16,32], index: 1, kind: output, shape index: {0}]   ;;  %s200_s2 = inlined_call_operand.vmem [shape: f32[16,1], index: 2, kind: output, shape index: {1}]  }
   0x1   :  { %9 = vsyncpa [#allocation4], 0  ;;  %s165_s9 = smov [#allocation2]  }
   0x2   :  { %s15_s10 = sshll.u32 %s165_s9, 4  ;;  %s16_s10 = int_to_ptr.vmem [resolvable:$true] %s15_s10 }
   0x3   :  { %s129_s11 = scalar_lea.vmem %s16_s10, 128  ;;  %p134_p1 = scmp.lt.s32.totalorder %s16_s10, %s16_s10 }
   0x4   :  { %p130_p0 = scmp.ne.s32.totalorder %s16_s10, %s129_s11  ;;  %p135_p2 = scmp.lt.s32.totalorder %s129_s11, %s129_s11 }
   0x6   :  { %p136_p3 = por %p135_p2, %p134_p1 }
   0x8   :  { %p137_p4 = pnand %p136_p3, %p130_p0 }
   0xa   :  { %140 = shalt.err (!%p137_p4)
}
   0xb   :  { %s166_s12 = smov 64   ;;  %s167_s13 = smov 4  }
   0xc   :  { %21 = dma.hbm_to_vmem [thread:$0]  %s198_s0, 128, %s16_s10, [#allocation3], %s166_s12, %s166_s12, %s167_s13  }
   0xd   :  { %161 = dma.done.wait [#allocation3], 128  }
   0xe   :  { %162 = vsyncadd [#allocation3], 4294967168  ;;  %v26_v0 = vld [vmem:[#allocation2] sm:$0xf]  ;;  %v27_v1 = vld [vmem:[#allocation2 + $0x4] sm:$0xf] }
   0xf   :  { %v28_v2 = vand.u32 2147450879, %v26_v0  ;;  %v29_v3 = vand.u32 2147450879, %v27_v1  ;;  %vm35_vm0 = vcmask 261120   ;;  %vm74_vm1 = vcmask 7168  }
  0x10   :  { %v49_v13 = vunpack.c.l.bf16 %v26_v0  ;;  %v50_v14 = vunpack.c.l.bf16 %v27_v1  ;;  %s168_s19 = smov [#allocation5]   ;;  %vm71_vm2 = vcmask 254976  }
  0x11   :  { %v98_v4 = vcombine.low %v28_v2, %v29_v3  ;;  %s82_s20 = sshll.u32 %s168_s19, 4  ;;  %s83_s20 = int_to_ptr.vmem [resolvable:$true] %s82_s20 }
  0x12   :  { %p146_p6 = scmp.lt.s32.totalorder %s83_s20, %s83_s20 }
  0x13   :  { %v38_v5 = vsel %vm35_vm0, %v98_v4, 4286644096 }
  0x14   :  { %40 = vmax.xlane.bf16.xlu0 %v38_v5 }
  0xa1   :  { %v41_v6 = vpop.xlane.xlu0 %40 }
  0xa2   :  { %v42_v7 = vunpack.c.l.bf16 %v41_v6  ;;  %v43_v8 = vunpack.c.h.bf16 %v41_v6 }
  0xa4   :  { %v44_v9 = vmax.f32 %v42_v7, 1e-07  ;;  %v45_v10 = vmax.f32 %v43_v8, 1e-07 }
  0xa6   :  { %v47_v11 = vmul.f32 0.007874016, %v44_v9  ;;  %v48_v12 = vmul.f32 0.007874016, %v45_v10 }
  0xa8   :  { %117 = vrcp.f32 %v47_v11  ;;  %75 = vst.msk [vmem:[%s200_s2] sm:$0xff] %vm74_vm1, %v47_v11  ;;  %76 = vst.msk [vmem:[%s200_s2 + $0x8] sm:$0xff] %vm74_vm1, %v48_v12  ;;  %s141_s2 = scalar_lea.vmem %s83_s20, 64 }
  0xa9   :  { %119 = vrcp.f32 %v48_v12  ;;  %p142_p5 = scmp.ne.s32.totalorder %s83_s20, %s141_s2  ;;  %p147_p7 = scmp.lt.s32.totalorder %s141_s2, %s141_s2 }
  0xab   :  { %p148_p8 = por %p147_p7, %p146_p6 }
  0xad   :  { %p149_p9 = pnand %p148_p8, %p142_p5 }
  0xb5   :  { %v118_v15 = vpop.eup %117 }
  0xb6   :  { %v120_v16 = vpop.eup %119  ;;  %v52_v17 = vmul.f32 %v118_v15, %v49_v13 }
  0xb7   :  { %v54_v18 = vmul.f32 %v120_v16, %v50_v14 }
  0xb8   :  { %v101_v19 = vclampa-f32 %v52_v17, -128, 127 }
  0xb9   :  { %v103_v20 = vclampa-f32 %v54_v18, -128, 127 }
  0xba   :  { %v107_v21 = vcvt.f32.s32 %v101_v19 }
  0xbb   :  { %v110_v22 = vcvt.f32.s32 %v103_v20 }
  0xbc   :  { %v67_v23 = vpack.c.b16 %v107_v21, %v107_v21 }
  0xbd   :  { %v69_v24 = vpack.c.b16 %v110_v22, %v110_v22 }
  0xbe   :  { %v68_v25 = vpack.c.b8 %v67_v23, %v67_v23 }
  0xbf   :  { %v70_v26 = vpack.c.b8 %v69_v24, %v69_v24 }
  0xc0   :  { %72 = vst.msk [vmem:[#allocation5] sm:$0x3] %vm71_vm2, %v68_v25 }
  0xc1   :  { %73 = vst.msk [vmem:[#allocation5 + $0x2] sm:$0x3] %vm71_vm2, %v70_v26 }
  0xc2   :  { %152 = shalt.err (!%p149_p9)
}
  0xc3   :  { %s169_s21 = smov 32   ;;  %s170_s22 = smov 2  }
  0xc4   :  { %88 = dma.vmem_to_hbm [thread:$0]  %s83_s20, 64, %s199_s1, [#allocation4], %s169_s21, %s169_s21, %s170_s22  }
  0xc5   :  { %163 = dma.done.wait [#allocation4], 64  }
  0xc6   :  { %164 = vsyncadd [#allocation4], 4294967232 }
  0xc7   :  { %96 = vsyncpa [#allocation3], 1 }
  0xc8   :  { %97 = vsyncpa [#allocation4], 1 }

</bundles_post_ra>
